<compile_context>
chip_gen: v5e
topology: v5e:2x2
jax: 0.10.0
libtpu: 0.0.40
codegen_flags: <defaults>
</compile_context>

<pallas_src>
import functools
import math

import jax
import jax.numpy as jnp
from jax.experimental import pallas as pl
from jax.experimental.pallas import tpu as pltpu


def _round_up(x, m):
    return ((x + m - 1) // m) * m


# ---------------------------------------------------------------------------
# Fused Q|K|V projection:  out = x @ Wqkv_T + b      (Wqkv_T pre-transposed)
# ---------------------------------------------------------------------------
def _qkv_proj_kernel(x_ref, wt_ref, b_ref, o_ref):
    # Matmul operands stay in their input dtype (bf16 -> fast MXU path);
    # accumulation in f32 via preferred_element_type.
    acc = jnp.dot(x_ref[...], wt_ref[...], preferred_element_type=jnp.float32)
    acc = acc + b_ref[...].astype(jnp.float32)
    o_ref[...] = acc.astype(o_ref.dtype)


def qkv_projection(x2d, wqkv_t, bqkv, *, tile_m=256):
    """x2d: (M, K); wqkv_t: (K, 3A) pre-transposed; bqkv: (3A,) -> (M, 3A)."""
    M, K = x2d.shape
    N = wqkv_t.shape[1]

    # Ragged-M handling: pad rows up to a multiple of the tile (padded rows are
    # zeros and their outputs are sliced off). Large tiles amortize the ~0.35us
    # per-grid-step overhead and fill the MXU rows.
    m8 = _round_up(max(M, 8), 8)
    tm = min(tile_m, m8)
    m_pad = _round_up(max(M, tm), tm)
    x_p = x2d if m_pad == M else jnp.pad(x2d, ((0, m_pad - M), (0, 0)))
    b2 = bqkv.reshape(1, N)

    itemsize = int(x2d.dtype.itemsize)
    cost = pl.CostEstimate(
        flops=2 * m_pad * K * N,
        transcendentals=0,
        bytes_accessed=(m_pad * K + K * N + N + m_pad * N) * itemsize,
    )

    out = pl.pallas_call(
        _qkv_proj_kernel,
        out_shape=jax.ShapeDtypeStruct((m_pad, N), x2d.dtype),
        grid_spec=pltpu.PrefetchScalarGridSpec(
            num_scalar_prefetch=0,
            grid=(m_pad // tm,),
            in_specs=[
                pl.BlockSpec((tm, K), lambda i: (i, 0)),   # activation tile
                # Weight / bias are grid-invariant (constant index_map). Left at
                # default buffering for lowering robustness; single-buffering
                # them would free K*N bytes of VMEM on v7x if ever needed.
                pl.BlockSpec((K, N), lambda i: (0, 0)),
                pl.BlockSpec((1, N), lambda i: (0, 0)),
            ],
            out_specs=pl.BlockSpec((tm, N), lambda i: (i, 0)),
        ),
        compiler_params=pltpu.CompilerParams(
            dimension_semantics=("parallel",),
            # Raise the scoped-VMEM default but leave headroom for v7x (64 MiB
            # physical per TensorCore).
            vmem_limit_bytes=48 * 1024 * 1024,
        ),
        cost_estimate=cost,
    )(x_p, wqkv_t, b2)
    return out if m_pad == M else out[:M]


# ---------------------------------------------------------------------------
# Cross attention: one grid step per batch element, all heads at once.
#   scores = (q @ k^T) * scale + mask ; p = softmax(scores) ; ctx = p @ v
# ---------------------------------------------------------------------------
def _cross_attn_kernel(q_ref, k_ref, v_ref, mask_ref, ctx_ref, probs_ref, *, scale):
    q = q_ref[0]                                    # (H, Sq, d)
    k = k_ref[0]                                    # (H, Sk, d)
    v = v_ref[0]                                    # (H, Sk, d)
    mask = mask_ref[0].astype(jnp.float32)          # (1, Sk) additive mask

    # Batched-over-heads matmul on the MXU, f32 accumulation.
    s = jnp.einsum('hqd,hkd->hqk', q, k, preferred_element_type=jnp.float32)
    s = s * scale + mask[None, :, :]                # (H, Sq, Sk)

    # Softmax in f32 (exp on EUP, reductions on XLU).
    m = jnp.max(s, axis=-1, keepdims=True)
    e = jnp.exp(s - m)
    denom = jnp.sum(e, axis=-1, keepdims=True)
    p = e / denom
    probs_ref[0] = p.astype(probs_ref.dtype)

    # TODO(synk): training-mode dropout on `p` not implemented (eval: identity).
    ctx = jnp.einsum('hqk,hkd->hqd', p.astype(v.dtype), v,
                     preferred_element_type=jnp.float32)
    ctx_ref[0] = ctx.astype(ctx_ref.dtype)


def cross_attention(q, k, v, mask, *, scale):
    """q: (B,H,Sq,d); k,v: (B,H,Sk,d); mask: (B,1,Sk) additive f32."""
    B, H, Sq, d = q.shape
    Sk = k.shape[2]
    itemsize = int(q.dtype.itemsize)
    cost = pl.CostEstimate(
        flops=4 * B * H * Sq * Sk * d,
        transcendentals=B * H * Sq * Sk,
        bytes_accessed=(B * H * (2 * Sq * d + 2 * Sk * d) * itemsize
                        + B * Sk * 4 + B * H * Sq * Sk * 4),
    )
    kernel = functools.partial(_cross_attn_kernel, scale=scale)
    ctx, probs = pl.pallas_call(
        kernel,
        out_shape=(
            jax.ShapeDtypeStruct((B, H, Sq, d), q.dtype),
            jax.ShapeDtypeStruct((B, H, Sq, Sk), jnp.float32),
        ),
        grid_spec=pltpu.PrefetchScalarGridSpec(
            num_scalar_prefetch=0,
            grid=(B,),
            in_specs=[
                pl.BlockSpec((1, H, Sq, d), lambda b: (b, 0, 0, 0)),
                pl.BlockSpec((1, H, Sk, d), lambda b: (b, 0, 0, 0)),
                pl.BlockSpec((1, H, Sk, d), lambda b: (b, 0, 0, 0)),
                pl.BlockSpec((1, 1, Sk), lambda b: (b, 0, 0)),
            ],
            out_specs=(
                pl.BlockSpec((1, H, Sq, d), lambda b: (b, 0, 0, 0)),
                pl.BlockSpec((1, H, Sq, Sk), lambda b: (b, 0, 0, 0)),
            ),
        ),
        compiler_params=pltpu.CompilerParams(
            dimension_semantics=("parallel",),   # batch axis shards across TCs on v7x
            vmem_limit_bytes=48 * 1024 * 1024,
        ),
        cost_estimate=cost,
    )(q, k, v, mask)
    return ctx, probs


# ---------------------------------------------------------------------------
# Module forward
# ---------------------------------------------------------------------------
def pack_params(raw, num_heads):
    """Pre-concatenate + pre-transpose Q/K/V weights once at setup time (hoists
    the per-forward weight transpose / HBM round trip out of the hot path)."""
    wqkv1_t = jnp.concatenate([raw["wq1"], raw["wk1"], raw["wv1"]], axis=0).T
    wqkv2_t = jnp.concatenate([raw["wq2"], raw["wk2"], raw["wv2"]], axis=0).T
    return {
        "num_heads": num_heads,
        "wqkv1_t": wqkv1_t,
        "bqkv1": jnp.concatenate([raw["bq1"], raw["bk1"], raw["bv1"]]),
        "wqkv2_t": wqkv2_t,
        "bqkv2": jnp.concatenate([raw["bq2"], raw["bk2"], raw["bv2"]]),
    }


def bert_bi_attention_forward(params, input_tensor1, attention_mask1,
                              input_tensor2, attention_mask2):
    """Pallas implementation of BertBiAttention.forward (eval mode, viz off)."""
    num_heads = params["num_heads"]
    B, S1, _ = input_tensor1.shape
    _, S2, _ = input_tensor2.shape
    A = params["wqkv1_t"].shape[1] // 3
    d = A // num_heads
    scale = 1.0 / math.sqrt(d)

    qkv1 = qkv_projection(input_tensor1.reshape(B * S1, -1),
                          params["wqkv1_t"], params["bqkv1"])
    qkv2 = qkv_projection(input_tensor2.reshape(B * S2, -1),
                          params["wqkv2_t"], params["bqkv2"])

    def split_heads(qkv, S):
        q, k, v = jnp.split(qkv, 3, axis=-1)
        to_h = lambda x: x.reshape(B, S, num_heads, d).transpose(0, 2, 1, 3)
        return to_h(q), to_h(k), to_h(v)

    q1, k1, v1 = split_heads(qkv1, S1)
    q2, k2, v2 = split_heads(qkv2, S2)

    # Additive masks. The reference broadcast-adds attention_mask1 (B,1,1,S1);
    # attention_mask2 is max-reduced over dim -2 unless already a row mask.
    assert attention_mask1.shape[1] == 1 and attention_mask1.shape[2] == 1, \
        "expected attention_mask1 of shape (B, 1, 1, S1)"
    mask1 = attention_mask1.reshape(B, 1, S1).astype(jnp.float32)
    if attention_mask2.shape[2] == 1:
        m2 = attention_mask2
    else:
        m2 = jnp.max(attention_mask2, axis=-2, keepdims=True)
    mask2 = m2.reshape(B, 1, S2).astype(jnp.float32)

    # Stream-1 attention: stream-2 queries attend to stream-1 keys/values.
    ctx1, probs1 = cross_attention(q2, k1, v1, mask1, scale=scale)  # (B,H,S2,d)
    # Stream-2 attention: stream-1 queries attend to stream-2 keys/values.
    ctx2, probs2 = cross_attention(q1, k2, v2, mask2, scale=scale)  # (B,H,S1,d)

    context_layer1 = ctx1.transpose(0, 2, 1, 3).reshape(B, S2, A)
    context_layer2 = ctx2.transpose(0, 2, 1, 3).reshape(B, S1, A)

    attn_data = None  # config.visualization != 'True'
    attn_data_b4_dropout = {"attn1": probs1, "attn2": probs2}
    return context_layer1, context_layer2, attn_data, attn_data_b4_dropout


# ---------------------------------------------------------------------------
# Pure-JAX reference (mirrors the PyTorch forward)
# ---------------------------------------------------------------------------
def _reference(raw, num_heads, input1, mask1, input2, mask2):
    A = raw["wq1"].shape[0]
    d = A // num_heads

    def heads(x):
        B, S, _ = x.shape
        return x.reshape(B, S, num_heads, d).transpose(0, 2, 1, 3)

    q1 = heads(input1 @ raw["wq1"].T + raw["bq1"])
    k1 = heads(input1 @ raw["wk1"].T + raw["bk1"])
    v1 = heads(input1 @ raw["wv1"].T + raw["bv1"])
    q2 = heads(input2 @ raw["wq2"].T + raw["bq2"])
    k2 = heads(input2 @ raw["wk2"].T + raw["bk2"])
    v2 = heads(input2 @ raw["wv2"].T + raw["bv2"])

    s1 = jnp.einsum('bhqd,bhkd->bhqk', q2, k1) / math.sqrt(d) + mask1
    p1 = jax.nn.softmax(s1, axis=-1)
    c1 = jnp.einsum('bhqk,bhkd->bhqd', p1, v1)
    c1 = c1.transpose(0, 2, 1, 3).reshape(input2.shape[0], input2.shape[1], A)

    if mask2.shape[2] == 1:
        m2 = mask2
    else:
        m2 = jnp.max(mask2, axis=-2, keepdims=True)
    s2 = jnp.einsum('bhqd,bhkd->bhqk', q1, k2) / math.sqrt(d) + m2
    p2 = jax.nn.softmax(s2, axis=-1)
    c2 = jnp.einsum('bhqk,bhkd->bhqd', p2, v2)
    c2 = c2.transpose(0, 2, 1, 3).reshape(input1.shape[0], input1.shape[1], A)
    return c1, c2, p1, p2


if __name__ == "__main__":
    # Small config: bi_hidden=32, 4 heads (head dim 8), v_hidden=l_hidden=32,
    # batch=2, visual seq=16, language seq=8.
    B, S1, S2 = 2, 16, 8
    bi_hidden, v_hidden, l_hidden, num_heads = 32, 32, 32, 4

    key = jax.random.PRNGKey(0)
    ks = jax.random.split(key, 16)

    def lin(kw, kb, out_dim, in_dim):
        return (jax.random.normal(kw, (out_dim, in_dim), jnp.float32) * 0.05,
                jax.random.normal(kb, (out_dim,), jnp.float32) * 0.01)

    raw = {}
    raw["wq1"], raw["bq1"] = lin(ks[0], ks[1], bi_hidden, v_hidden)
    raw["wk1"], raw["bk1"] = lin(ks[2], ks[3], bi_hidden, v_hidden)
    raw["wv1"], raw["bv1"] = lin(ks[4], ks[5], bi_hidden, v_hidden)
    raw["wq2"], raw["bq2"] = lin(ks[6], ks[7], bi_hidden, l_hidden)
    raw["wk2"], raw["bk2"] = lin(ks[8], ks[9], bi_hidden, l_hidden)
    raw["wv2"], raw["bv2"] = lin(ks[10], ks[11], bi_hidden, l_hidden)
    params = pack_params(raw, num_heads)

    input_tensor1 = jax.random.normal(ks[12], (B, S1, v_hidden), jnp.float32)
    input_tensor2 = jax.random.normal(ks[13], (B, S2, l_hidden), jnp.float32)

    # Additive masks: 0 for visible positions, -10000 for padded positions.
    vis_valid = jnp.arange(S1) < (S1 - 2)
    lang_valid = jnp.arange(S2) < (S2 - 1)
    attention_mask1 = jnp.broadcast_to(
        jnp.where(vis_valid, 0.0, -10000.0).astype(jnp.float32), (B, 1, 1, S1))
    attention_mask2 = jnp.broadcast_to(
        jnp.where(lang_valid, 0.0, -10000.0).astype(jnp.float32), (B, 1, 1, S2))

    c1, c2, attn_data, attn_b4 = bert_bi_attention_forward(
        params, input_tensor1, attention_mask1, input_tensor2, attention_mask2)
    jax.block_until_ready((c1, c2, attn_b4["attn1"], attn_b4["attn2"]))

    r1, r2, rp1, rp2 = _reference(raw, num_heads, input_tensor1,
                                  attention_mask1, input_tensor2,
                                  attention_mask2)
    assert jnp.allclose(c1, r1, atol=2e-3, rtol=2e-3), "context_layer1 mismatch"
    assert jnp.allclose(c2, r2, atol=2e-3, rtol=2e-3), "context_layer2 mismatch"
    assert jnp.allclose(attn_b4["attn1"], rp1, atol=2e-3, rtol=2e-3), "attn1 mismatch"
    assert jnp.allclose(attn_b4["attn2"], rp2, atol=2e-3, rtol=2e-3), "attn2 mismatch"

    print("KERNEL_OK")
</pallas_src>

<mosaic_0001>
module attributes {stable_mosaic.version = 11 : i64} {
  func.func @_qkv_proj_kernel(%arg0: i32, %arg1: memref<32x32xf32, #tpu.memory_space<vmem>>, %arg2: memref<32x96xf32, #tpu.memory_space<vmem>>, %arg3: memref<1x96xf32, #tpu.memory_space<vmem>>, %arg4: memref<32x96xf32, #tpu.memory_space<vmem>>) attributes {dimension_semantics = [#tpu.dimension_semantics<parallel>], iteration_bounds = array<i64: 1>, scalar_prefetch = 0 : i64, scratch_operands = 0 : i64, tpu.core_type = #tpu.core_type<tc>, window_params = [{transform_indices = @transform_0, window_bounds = array<i64: 32, 32>}, {pipeline_mode = #tpu.pipeline_mode<synchronous>, transform_indices = @transform_1, window_bounds = array<i64: 32, 96>}, {pipeline_mode = #tpu.pipeline_mode<synchronous>, transform_indices = @transform_2, window_bounds = array<i64: 1, 96>}, {transform_indices = @transform_3, window_bounds = array<i64: 32, 96>}]} {
    %c0 = arith.constant 0 : index
    %c0_0 = arith.constant 0 : index
    %0 = vector.load %arg1[%c0, %c0_0] : memref<32x32xf32, #tpu.memory_space<vmem>>, vector<32x32xf32>
    %c0_1 = arith.constant 0 : index
    %c0_2 = arith.constant 0 : index
    %1 = vector.load %arg2[%c0_1, %c0_2] : memref<32x96xf32, #tpu.memory_space<vmem>>, vector<32x96xf32>
    %cst = arith.constant dense<0.000000e+00> : vector<32x96xf32>
    %2 = tpu.matmul %0, %1, %cst {dimension_numbers = #tpu.dot_dimension_numbers<[1], [0], [0], [1], [0, 0, 1, 1], [], []>} : vector<32x32xf32>, vector<32x96xf32>, vector<32x96xf32> -> vector<32x96xf32>
    %c0_3 = arith.constant 0 : index
    %c0_4 = arith.constant 0 : index
    %3 = vector.load %arg3[%c0_3, %c0_4] : memref<1x96xf32, #tpu.memory_space<vmem>>, vector<1x96xf32>
    %4 = vector.broadcast %3 : vector<1x96xf32> to vector<32x96xf32>
    %5 = arith.addf %2, %4 : vector<32x96xf32>
    %c0_5 = arith.constant 0 : index
    %c0_6 = arith.constant 0 : index
    %6 = vector.load %arg4[%c0_5, %c0_6] : memref<32x96xf32, #tpu.memory_space<vmem>>, vector<32x96xf32>
    tpu.vector_store %arg4[%c0_5, %c0_6], %5 {strides = array<i32>} : memref<32x96xf32, #tpu.memory_space<vmem>>, vector<32x96xf32>,
    return
  }
  func.func @transform_0(%arg0: i32) -> (i32, i32) {
    %c0_i32 = arith.constant 0 : i32
    %c0_i32_0 = arith.constant 0 : i32
    return %arg0, %c0_i32 : i32, i32
  }
  func.func @transform_1(%arg0: i32) -> (i32, i32) {
    %c0_i32 = arith.constant 0 : i32
    %c0_i32_0 = arith.constant 0 : i32
    %c0_i32_1 = arith.constant 0 : i32
    return %c0_i32, %c0_i32_0 : i32, i32
  }
  func.func @transform_2(%arg0: i32) -> (i32, i32) {
    %c0_i32 = arith.constant 0 : i32
    %c0_i32_0 = arith.constant 0 : i32
    %c0_i32_1 = arith.constant 0 : i32
    return %c0_i32, %c0_i32_0 : i32, i32
  }
  func.func @transform_3(%arg0: i32) -> (i32, i32) {
    %c0_i32 = arith.constant 0 : i32
    %c0_i32_0 = arith.constant 0 : i32
    return %arg0, %c0_i32 : i32, i32
  }
}

</mosaic_0001>

<bundles_post_ra>
// kernel: tpu_custom_call.1
= control target key start
LH: loop header
LB: loop body
LE: loop exit
PB: predicated region body
PF: predicated region fallthrough
CT: control target
= control target key end

     0   :  { %8 = vsyncpa [#allocation3], 0  ;;  %s276_s0 = inlined_call_operand.hbm [shape: f32[32,32], index: 0, kind: input, shape index: {}]   ;;  %s277_s1 = inlined_call_operand.hbm [shape: f32[32,96], index: 1, kind: input, shape index: {}]   ;;  %s278_s2 = inlined_call_operand.vmem [shape: f32[1,96], index: 2, kind: input, shape index: {}]   ;;  %s279_s3 = inlined_call_operand.hbm [shape: f32[32,96], index: 3, kind: output, shape index: {}]  }
   0x1   :  { %9 = vsyncpa [#allocation6], 0 }
   0x2   :  { %10 = vsyncpa [#allocation4], 0  ;;  %s15_s14 = sshll.u32 %s276_s0, 4  ;;  %s226_s15 = smov [#allocation2]   ;;  %s16_s14 = int_to_ptr.hbm [resolvable:$true] %s15_s14 }
   0x3   :  { %s17_s16 = sshll.u32 %s226_s15, 4  ;;  %s28_s19 = sshll.u32 %s277_s1, 4  ;;  %s18_s16 = int_to_ptr.vmem [resolvable:$true] %s17_s16  ;;  %s29_s19 = int_to_ptr.hbm [resolvable:$true] %s28_s19 }
   0x4   :  { %s227_s20 = smov 128   ;;  %s228_s21 = smov 8  }
   0x5   :  { %23 = dma.hbm_to_vmem [thread:$0]  %s16_s14, 512, %s18_s16, [#allocation3], %s227_s20, %s227_s20, %s228_s21  }
   0x6   :  { %s229_s22 = smov [#allocation5]  }
   0x7   :  { %s30_s23 = sshll.u32 %s229_s22, 4  ;;  %s31_s23 = int_to_ptr.vmem [resolvable:$true] %s30_s23 }
   0x8   :  { %36 = dma.hbm_to_vmem [thread:$0]  %s29_s19, 512, %s31_s23, [#allocation6], %s227_s20, %s227_s20, %s228_s21  }
   0x9   :  { %220 = dma.done.wait [#allocation3], 512  }
   0xa   :  { %221 = vsyncadd [#allocation3], 4294966784 }
   0xb   :  { %222 = dma.done.wait [#allocation6], 512  }
   0xc   :  { %223 = vsyncadd [#allocation6], 4294966784  ;;  %v54_v0 = vld [vmem:[#allocation5 + $0x18] sm:$0xff]  ;;  %v53_v1 = vld [vmem:[#allocation5 + $0x10] sm:$0xff]  ;;  %vm59_vm0 = vcmask 261120   ;;  %vm101_vm1 = vcmask 785408  }
   0xd   :  { %131 = vmatpush.msra.mxu2 %v54_v0  ;;  %132 = vmatpush.msra.mxu3 %v54_v0  ;;  %v52_v2 = vld [vmem:[#allocation5 + $0x8] sm:$0xff]  ;;  %v51_v3 = vld [vmem:[#allocation5] sm:$0xff]  ;;  %v49_v4 = vld [vmem:[#allocation2 + $0x10] sm:$0xff]  ;;  %s230_s24 = smov [#allocation7]   ;;  %s112_s28 = sshll.u32 %s279_s3, 4  ;;  %s113_s28 = int_to_ptr.hbm [resolvable:$true] %s112_s28 }
   0xe   :  { %84 = vmatpush.msra.mxu0 %v54_v0  ;;  %130 = vmatpush.msra.mxu1 %v54_v0  ;;  %v50_v5 = vld [vmem:[#allocation2 + $0x18] sm:$0xff]  ;;  %v47_v6 = vld [vmem:[#allocation2] sm:$0xff]  ;;  %v48_v7 = vld [vmem:[#allocation2 + $0x8] sm:$0xff]  ;;  %s110_s25 = sshll.u32 %s230_s24, 4  ;;  %s111_s25 = int_to_ptr.vmem [resolvable:$true] %s110_s25 }
   0xf   :  { %134 = vmatpush.msra.mxu2 %v53_v1  ;;  %135 = vmatpush.msra.mxu3 %v53_v1  ;;  %v147_v8 = vld [vmem:[%s278_s2] ss:$0 sm:$0xff] }
  0x10   :  { %85 = vmatpush.msra.mxu0 %v53_v1  ;;  %133 = vmatpush.msra.mxu1 %v53_v1 }
  0x11   :  { %137 = vmatpush.msra.mxu2 %v52_v2  ;;  %138 = vmatpush.msra.mxu3 %v52_v2 }
  0x12   :  { %86 = vmatpush.msra.mxu0 %v52_v2  ;;  %136 = vmatpush.msra.mxu1 %v52_v2 }
  0x13   :  { %140 = vmatpush.msra.mxu2 %v51_v3  ;;  %141 = vmatpush.msra.mxu3 %v51_v3 }
  0x14   :  { %128 = vmatmul.msk.f32.vlgmr.msra.gmra.mxu2 %vm59_vm0, %v49_v4  ;;  %129 = vmatmul.msk.f32.vlgmr.msra.gmra.mxu3 %vm59_vm0, %v50_v5 }
  0x15   :  { %87 = vmatpush.msra.mxu0 %v51_v3  ;;  %139 = vmatpush.msra.mxu1 %v51_v3 }
  0x16   :  { %126 = vmatmul.msk.f32.vlgmr.msra.gmra.mxu0 %vm59_vm0, %v47_v6  ;;  %127 = vmatmul.msk.f32.vlgmr.msra.gmra.mxu1 %vm59_vm0, %v48_v7 }
  0x93   :  { %v89_v9 = vpop.f32.mrf.mxu0  ;;  %v92_v10 = vpop.f32.mrf.mxu1 }
  0x94   :  { %v90_v11 = vadd.f32 %v147_v8, %v89_v9  ;;  %v93_v12 = vadd.f32 %v147_v8, %v92_v10 }
  0x96   :  { %102 = vst.msk [vmem:[#allocation7] sm:$0xff] %vm101_vm1, %v90_v11 }
  0x97   :  { %103 = vst.msk [vmem:[#allocation7 + $0x8] sm:$0xff] %vm101_vm1, %v93_v12  ;;  %v95_v13 = vpop.f32.mrf.mxu2  ;;  %v98_v14 = vpop.f32.mrf.mxu3 }
  0x98   :  { %v96_v15 = vadd.f32 %v147_v8, %v95_v13  ;;  %v99_v16 = vadd.f32 %v147_v8, %v98_v14 }
  0x9a   :  { %104 = vst.msk [vmem:[#allocation7 + $0x10] sm:$0xff] %vm101_vm1, %v96_v15 }
  0x9b   :  { %105 = vst.msk [vmem:[#allocation7 + $0x18] sm:$0xff] %vm101_vm1, %v99_v16 }
  0x9c   :  { %118 = dma.vmem_to_hbm [thread:$0]  %s111_s25, 512, %s113_s28, [#allocation4], %s227_s20, %s227_s20, %s228_s21  }
  0x9d   :  { %224 = dma.done.wait [#allocation4], 512  }
  0x9e   :  { %225 = vsyncadd [#allocation4], 4294966784 }
  0x9f   :  { %123 = vsyncpa [#allocation3], 1 }
  0xa0   :  { %124 = vsyncpa [#allocation6], 1 }
  0xa1   :  { %125 = vsyncpa [#allocation4], 1 }

</bundles_post_ra>
